<compile_context>
chip_gen: v7x
topology: tpu7x:2x2x1
jax: 0.10.0
libtpu: 0.0.40
codegen_flags: <defaults>
</compile_context>

<pallas_src>
import functools
import math

import jax
import jax.numpy as jnp
from jax.experimental import pallas as pl
from jax.experimental.pallas import tpu as pltpu

_LANES = 128
_SUBLANES = 8
_LN2 = math.log(2.0)


def _bce_partial_kernel(x_ref, y_ref, out_ref):
    """Accumulates (8, 128) partial sums of BCE-with-logits losses.

    out_ref is an (8, 128) f32 block owned by grid index p (parallel axis) and
    resident across the inner reduction axis j, so it doubles as the
    accumulator (no scratch needed).
    """
    j = pl.program_id(1)

    @pl.when(j == 0)
    def _():
        out_ref[...] = jnp.zeros_like(out_ref)

    # Cast to f32 inside the kernel (keeps HBM traffic at native width; f32
    # math avoids emulated bf16 VPU ops on v5e).
    x = x_ref[...].astype(jnp.float32)
    y = y_ref[...].astype(jnp.float32)

    # Numerically stable BCE-with-logits (matches PyTorch):
    #   l = max(x, 0) - x*y + log(1 + exp(-|x|))
    loss = jnp.maximum(x, 0.0) - x * y + jnp.log1p(jnp.exp(-jnp.abs(x)))

    # Reduce only over groups of 8 sublanes (layout-preserving reshape, plain
    # vector adds); the final cross-lane reduce happens once in the wrapper.
    out_ref[...] += jnp.sum(loss.reshape(-1, _SUBLANES, _LANES), axis=0)


def _round_up(x, m):
    return ((x + m - 1) // m) * m


@functools.partial(jax.jit, static_argnames=("max_tile_rows", "num_cores"))
def sig_loss(preds, targets, *, max_tile_rows=2048, num_cores=2):
    """BCEWithLogitsLoss(reduction='mean') over arbitrarily shaped inputs."""
    assert preds.shape == targets.shape
    n_elems = preds.size

    x = preds.reshape(-1)
    y = targets.reshape(-1)

    # Sublane alignment for the block shape (8 for 32-bit, 16 for 16-bit, ...).
    min_isz = min(jnp.dtype(x.dtype).itemsize, jnp.dtype(y.dtype).itemsize, 4)
    align = _SUBLANES * (4 // min_isz)

    rows = (n_elems + _LANES - 1) // _LANES
    tile_rows = min(max_tile_rows, _round_up(rows, align))
    tile_rows = _round_up(tile_rows, align)

    padded_rows = _round_up(rows, tile_rows * num_cores)
    padded = padded_rows * _LANES
    pad = padded - n_elems
    if pad:
        x = jnp.pad(x, (0, pad))
        y = jnp.pad(y, (0, pad))

    x2 = x.reshape(padded_rows, _LANES)
    y2 = y.reshape(padded_rows, _LANES)

    inner = padded_rows // (tile_rows * num_cores)
    grid = (num_cores, inner)
    block = (tile_rows, _LANES)

    out_rows = num_cores * _SUBLANES
    cost = pl.CostEstimate(
        flops=6 * padded,
        transcendentals=2 * padded,
        bytes_accessed=int(
            x2.size * x2.dtype.itemsize
            + y2.size * y2.dtype.itemsize
            + out_rows * _LANES * 4
        ),
    )

    partials = pl.pallas_call(
        _bce_partial_kernel,
        out_shape=jax.ShapeDtypeStruct((out_rows, _LANES), jnp.float32),
        grid_spec=pltpu.PrefetchScalarGridSpec(
            num_scalar_prefetch=0,
            grid=grid,
            in_specs=[
                pl.BlockSpec(block, lambda p, j: (p * inner + j, 0)),
                pl.BlockSpec(block, lambda p, j: (p * inner + j, 0)),
            ],
            out_specs=pl.BlockSpec((_SUBLANES, _LANES), lambda p, j: (p, 0)),
        ),
        compiler_params=pltpu.CompilerParams(
            dimension_semantics=("parallel", "arbitrary"),
        ),
        cost_estimate=cost,
    )(x2, y2)

    # Padding elements (x=0, y=0) each contribute exactly log(2); remove them.
    total = jnp.sum(partials) - jnp.float32(pad) * jnp.float32(_LN2)
    return (total / jnp.float32(n_elems)).astype(jnp.float32)


def _reference(preds, targets):
    x = preds.astype(jnp.float32)
    y = targets.astype(jnp.float32)
    l = jnp.maximum(x, 0.0) - x * y + jnp.log1p(jnp.exp(-jnp.abs(x)))
    return jnp.mean(l)


if __name__ == "__main__":
    key = jax.random.PRNGKey(0)
    k1, k2 = jax.random.split(key)
    # Shapes implied by a typical NCHW use: batch=2, channels=4, spatial=16.
    preds = jax.random.normal(k1, (2, 4, 16, 16), dtype=jnp.float32)
    targets = (jax.random.uniform(k2, (2, 4, 16, 16)) > 0.5).astype(jnp.float32)

    out = sig_loss(preds, targets)
    out = jax.block_until_ready(out)

    ref = _reference(preds, targets)
    assert jnp.allclose(out, ref, atol=1e-5, rtol=1e-5), (out, ref)
    print("KERNEL_OK")
</pallas_src>

<mosaic_0001>
module attributes {stable_mosaic.version = 11 : i64} {
  func.func @_bce_partial_kernel(%arg0: i32, %arg1: i32, %arg2: memref<16x128xf32, #tpu.memory_space<vmem>>, %arg3: memref<16x128xf32, #tpu.memory_space<vmem>>, %arg4: memref<8x128xf32, #tpu.memory_space<vmem>>) attributes {dimension_semantics = [#tpu.dimension_semantics<parallel>, #tpu.dimension_semantics<arbitrary>], iteration_bounds = array<i64: 2, 1>, scalar_prefetch = 0 : i64, scratch_operands = 0 : i64, tpu.core_type = #tpu.core_type<tc>, window_params = [{transform_indices = @transform_0, window_bounds = array<i64: 16, 128>}, {transform_indices = @transform_1, window_bounds = array<i64: 16, 128>}, {transform_indices = @transform_2, window_bounds = array<i64: 8, 128>}]} {
    %c0_i32 = arith.constant 0 : i32
    %0 = arith.cmpi eq, %arg1, %c0_i32 : i32
    %1 = arith.extui %0 : i1 to i32
    %c0_i32_0 = arith.constant 0 : i32
    %2 = arith.cmpi ne, %1, %c0_i32_0 : i32
    scf.if %2 {
      %cst_10 = arith.constant 0.000000e+00 : f32
      %20 = vector.broadcast %cst_10 : f32 to vector<8x128xf32>
      %c0_11 = arith.constant 0 : index
      %c0_12 = arith.constant 0 : index
      %21 = vector.load %arg4[%c0_11, %c0_12] : memref<8x128xf32, #tpu.memory_space<vmem>>, vector<8x128xf32>
      tpu.vector_store %arg4[%c0_11, %c0_12], %20 {strides = array<i32>} : memref<8x128xf32, #tpu.memory_space<vmem>>, vector<8x128xf32>,
    } else {
    }
    %c0 = arith.constant 0 : index
    %c0_1 = arith.constant 0 : index
    %3 = vector.load %arg2[%c0, %c0_1] : memref<16x128xf32, #tpu.memory_space<vmem>>, vector<16x128xf32>
    %c0_2 = arith.constant 0 : index
    %c0_3 = arith.constant 0 : index
    %4 = vector.load %arg3[%c0_2, %c0_3] : memref<16x128xf32, #tpu.memory_space<vmem>>, vector<16x128xf32>
    %cst = arith.constant 0.000000e+00 : f32
    %5 = vector.broadcast %cst : f32 to vector<16x128xf32>
    %6 = arith.maximumf %3, %5 : vector<16x128xf32>
    %7 = arith.mulf %3, %4 : vector<16x128xf32>
    %8 = arith.subf %6, %7 : vector<16x128xf32>
    %9 = math.absf %3 : vector<16x128xf32>
    %cst_4 = arith.constant 0.000000e+00 : f32
    %10 = vector.broadcast %cst_4 : f32 to vector<16x128xf32>
    %11 = arith.subf %10, %9 : vector<16x128xf32>
    %12 = math.exp %11 : vector<16x128xf32>
    %13 = math.log1p %12 : vector<16x128xf32>
    %14 = arith.addf %8, %13 : vector<16x128xf32>
    %c0_5 = arith.constant 0 : index
    %c0_6 = arith.constant 0 : index
    %15 = vector.load %arg4[%c0_5, %c0_6] : memref<8x128xf32, #tpu.memory_space<vmem>>, vector<8x128xf32>
    %16 = vector.shape_cast %14 : vector<16x128xf32> to vector<2x8x128xf32>
    %cst_7 = arith.constant dense<0.000000e+00> : vector<8x128xf32>
    %17 = vector.multi_reduction <add>, %16, %cst_7 [0] : vector<2x8x128xf32> to vector<8x128xf32>
    %18 = arith.addf %15, %17 : vector<8x128xf32>
    %c0_8 = arith.constant 0 : index
    %c0_9 = arith.constant 0 : index
    %19 = vector.load %arg4[%c0_8, %c0_9] : memref<8x128xf32, #tpu.memory_space<vmem>>, vector<8x128xf32>
    tpu.vector_store %arg4[%c0_8, %c0_9], %18 {strides = array<i32>} : memref<8x128xf32, #tpu.memory_space<vmem>>, vector<8x128xf32>,
    return
  }
  func.func @transform_0(%arg0: i32, %arg1: i32) -> (i32, i32) {
    %c1_i32 = arith.constant 1 : i32
    %0 = arith.muli %arg0, %c1_i32 : i32
    %1 = arith.addi %0, %arg1 : i32
    %c0_i32 = arith.constant 0 : i32
    %c0_i32_0 = arith.constant 0 : i32
    return %1, %c0_i32 : i32, i32
  }
  func.func @transform_1(%arg0: i32, %arg1: i32) -> (i32, i32) {
    %c1_i32 = arith.constant 1 : i32
    %0 = arith.muli %arg0, %c1_i32 : i32
    %1 = arith.addi %0, %arg1 : i32
    %c0_i32 = arith.constant 0 : i32
    %c0_i32_0 = arith.constant 0 : i32
    return %1, %c0_i32 : i32, i32
  }
  func.func @transform_2(%arg0: i32, %arg1: i32) -> (i32, i32) {
    %c0_i32 = arith.constant 0 : i32
    %c0_i32_0 = arith.constant 0 : i32
    return %arg0, %c0_i32 : i32, i32
  }
}

</mosaic_0001>

<bundles_post_ra>
// kernel: sig_loss.1
= control target key start
LH: loop header
LB: loop body
LE: loop exit
PB: predicated region body
PF: predicated region fallthrough
CT: control target
= control target key end

     0   :  { %s396_s9 = smov 0   ;;  %s398_s10 = smov 0   ;;  %s437_s0 = inlined_call_operand.vmem [shape: f32[32,128], index: 0, kind: input, shape index: {}]   ;;  %s438_s1 = inlined_call_operand.vmem [shape: f32[32,128], index: 1, kind: input, shape index: {}]   ;;  %s439_s2 = inlined_call_operand.vmem [shape: f32[16,128], index: 2, kind: output, shape index: {}]  }
   0x1   :  { %s400_s11 = smov 0  }
   0x2 LB: > { %s24_s12 = sadd.s32 1, %s375_s10  ;;  %p316_p0 = scmp.ge.s32.totalorder %s379_s11, 1  ;;  %s379_s11 = sphi %s400_s11, %s12_s11   ;;  %s375_s10 = sphi %s398_s10, %s441_s10   ;;  %s371_s9 = sphi %s396_s9, %s440_s9  }
   0x3   : > { %p26_p1 = scmp.ge.s32.totalorder %s24_s12, 2  ;;  %p144_p2 = scmp.lt.s32.totalorder %s379_s11, 3 }
   0x5   : > { %s443_s12 = smov (%p26_p1, %s24_s12), 0  ;;  %p145_p3 = pnand %p316_p0, %p144_p2 }
   0x6   : > { %s317_s13 = sshll.u32 (!%p145_p3), %s371_s9, 1  ;;  %p188_p5 = scmp.lt.s32.totalorder (!%p145_p3), %s371_s9, 1 }
   0x7   : > { %148 = sbr.rel (%p145_p3) target bundleno = 57 (0x39), region = 28  ;;  %p174_p4 = scmp.lt.s32.totalorder (!%p145_p3), %s317_s13, 3 }
   0xe   : > { %s445_s13 = smov (!%p174_p4, %s317_s13), 3  ;;  %s447_s9 = smov (!%p188_p5, %s371_s9), 1 }
   0xf   : > { %s318_s14 = sshll.u32 %s445_s13, 3  ;;  %s321_s21 = sshll.u32 %s447_s9, 3 }
  0x10   : > { %s177_s17 = scalar_lea.vmem %s437_s0, %s318_s14  ;;  %s185_s20 = scalar_lea.vmem %s438_s1, %s318_s14 }
  0x11   : > { %v197_v0 = vld [vmem:[%s177_s17] sm:$0xff]  ;;  %v198_v1 = vld [vmem:[%s177_s17 + $0x8] sm:$0xff]  ;;  %s191_s24 = scalar_lea.vmem %s439_s2, %s321_s21 }
  0x12   : > { %v207_v2 = vand.u32 2147483647, %v197_v0  ;;  %v208_v3 = vand.u32 2147483647, %v198_v1  ;;  %v199_v14 = vld [vmem:[%s185_s20] sm:$0xff]  ;;  %v200_v15 = vld [vmem:[%s185_s20 + $0x8] sm:$0xff] }
  0x13   : > { %v201_v17 = vmax.f32 %v197_v0, 0.0  ;;  %v203_v18 = vmul.f32 %v199_v14, %v197_v0  ;;  %v202_v21 = vmax.f32 %v198_v1, 0.0  ;;  %v204_v22 = vmul.f32 %v200_v15, %v198_v1 }
  0x14   : > { %v209_v4 = vsub.f32 0.0, %v207_v2  ;;  %v210_v5 = vsub.f32 0.0, %v208_v3 }
  0x15   : > { %v205_v26 = vsub.f32 %v201_v17, %v203_v18  ;;  %v206_v29 = vsub.f32 %v202_v21, %v204_v22 }
  0x16   : > { %v211_v6 = vmul.f32 1.442695, %v209_v4  ;;  %v213_v7 = vmul.f32 1.442695, %v210_v5 }
  0x18   : > { %349 = vpow2.f32 %v211_v6 }
  0x19   : > { %351 = vpow2.f32 %v213_v7 }
  0x22   : > { %v350_v8 = vpop.eup %349 }
  0x23   : > { %v352_v9 = vpop.eup %351  ;;  %v215_v10 = vadd.f32 1.0, %v350_v8  ;;  %v218_v12 = vmul.f32 -0.5, %v350_v8  ;;  %v221_v19 = vand.u32 2147483647, %v350_v8 }
  0x24   : > { %v224_v11 = vadd.f32 1.0, %v352_v9  ;;  %v227_v13 = vmul.f32 -0.5, %v352_v9  ;;  %v230_v23 = vand.u32 2147483647, %v352_v9 }
  0x25   : > { %353 = vlog2.f32 %v215_v10  ;;  %v219_v16 = vadd.f32 1.0, %v218_v12  ;;  %vm222_vm0 = vcmp.lt.f32.partialorder %v221_v19, 0.0004427343 }
  0x26   : > { %355 = vlog2.f32 %v224_v11  ;;  %v228_v20 = vadd.f32 1.0, %v227_v13  ;;  %vm231_vm1 = vcmp.lt.f32.partialorder %v230_v23, 0.0004427343 }
  0x27   : > { %v220_v24 = vmul.f32 %v350_v8, %v219_v16 }
  0x28   : > { %v229_v27 = vmul.f32 %v352_v9, %v228_v20 }
  0x2f   : > { %v354_v25 = vpop.eup %353 }
  0x30   : > { %v356_v28 = vpop.eup %355  ;;  %v217_v30 = vmul.f32 0.6931472, %v354_v25 }
  0x31   : > { %v226_v31 = vmul.f32 0.6931472, %v356_v28 }
  0x32   : > { %v223_v32 = vsel %vm222_vm0, %v220_v24, %v217_v30 }
  0x33   : > { %v232_v33 = vsel %vm231_vm1, %v229_v27, %v226_v31  ;;  %v233_v34 = vadd.f32 %v223_v32, %v205_v26 }
  0x34   : > { %v234_v35 = vadd.f32 %v232_v33, %v206_v29 }
  0x36   : > { %v236_v36 = vadd.f32 %v234_v35, %v233_v34 }
  0x38   : > { %238 = vst [vmem:[%s191_s24] sm:$0xff] %v236_v36 }
  0x39 PF: > { %s12_s11 = sadd.s32 1, %s379_s11   ;;  %s440_s9 = smov %s375_s10 }
  0x3a   : > { %p9_p6 = scmp.ge.s32.totalorder %s12_s11, 4   ;;  %s441_s10 = smov %s443_s12 }
  0x3c   :  { %11 = sbr.rel (!%p9_p6) target bundleno = 2 (0x2), region = 65 }

</bundles_post_ra>
